<compile_context>
chip_gen: v7x
topology: tpu7x:2x2x1
jax: 0.10.0
libtpu: 0.0.40
codegen_flags: <defaults>
</compile_context>

<pallas_src>
import functools

import jax
import jax.numpy as jnp
from jax.experimental import pallas as pl
from jax.experimental.pallas import tpu as pltpu


def _se_kernel(x_ref, w1_ref, b1_ref, w2_ref, b2_ref, out_ref, acc_ref, *, inv_hw):
    """One grid step. Grid = (batch_tiles, spatial_tiles); spatial is the reduction.

    x_ref   : (TB, C, THW)  activation tile, native dtype
    w1_ref  : (C, Cr)       FC1 weight stored as (in, out)
    b1_ref  : (1, Cr)
    w2_ref  : (Cr, C)       FC2 weight stored as (in, out)
    b2_ref  : (1, C)
    out_ref : (TB, C)       sigmoid gate (resident across the spatial axis)
    acc_ref : (TB, C) f32   spatial-sum accumulator (VMEM scratch)
    """
    s_idx = pl.program_id(1)

    @pl.when(s_idx == 0)
    def _init():
        acc_ref[...] = jnp.zeros_like(acc_ref)

    # Partial spatial sum for this tile; cast per-tile, accumulate in f32.
    x = x_ref[...].astype(jnp.float32)            # (TB, C, THW)
    acc_ref[...] += jnp.sum(x, axis=-1)           # (TB, C)

    @pl.when(s_idx == pl.num_programs(1) - 1)
    def _finalize():
        s = acc_ref[...] * inv_hw                 # mean over H*W  -> (TB, C)
        h = jnp.dot(s, w1_ref[...], preferred_element_type=jnp.float32) + b1_ref[...]
        h = jnp.maximum(h, 0.0)                   # ReLU
        o = jnp.dot(h, w2_ref[...], preferred_element_type=jnp.float32) + b2_ref[...]
        out_ref[...] = jax.nn.sigmoid(o).astype(out_ref.dtype)


def _pick_spatial_tile(hw):
    """Largest multiple-of-128 tile that divides HW (else the full extent)."""
    for cand in (2048, 1024, 512, 256, 128):
        if hw % cand == 0:
            return cand
    return hw  # full-extent lane dim is always a legal block size


def _pick_batch_tile(batch, c, thw, itemsize, budget_bytes):
    """Batch tile must be the full batch or a multiple of 8 (output sublane rule)."""
    cands = sorted({d for d in range(8, batch + 1, 8) if batch % d == 0} | {batch})
    fitting = [tb for tb in cands if tb * c * thw * itemsize <= budget_bytes]
    return max(fitting) if fitting else min(cands)


def se_block(x_nchw, w1, b1, w2, b2, *, vmem_budget_bytes=4 * 1024 * 1024):
    """x_nchw: (B, C, H, W); w1: (C, C//r); b1: (C//r,); w2: (C//r, C); b2: (C,).

    Weights are stored already-transposed relative to nn.Linear (i.e. (in, out)).
    Returns (B, C, 1, 1), matching SEBlock.forward.
    """
    B, C, H, W = x_nchw.shape
    HW = H * W
    Cr = w1.shape[1]

    # Activation kept in native dtype (bf16 in real models): no wrapper upcast.
    x_flat = x_nchw.reshape(B, C, HW)
    w1f = w1.astype(jnp.float32)
    w2f = w2.astype(jnp.float32)
    b1_2d = b1.reshape(1, Cr).astype(jnp.float32)
    b2_2d = b2.reshape(1, C).astype(jnp.float32)

    THW = _pick_spatial_tile(HW)
    TB = _pick_batch_tile(B, C, THW, x_flat.dtype.itemsize, vmem_budget_bytes)
    grid = (B // TB, HW // THW)

    kernel = functools.partial(_se_kernel, inv_hw=1.0 / float(HW))

    cost = pl.CostEstimate(
        flops=2 * B * C * HW + 4 * B * C * Cr,          # reduction + two tiny FCs
        transcendentals=B * C,                           # sigmoid
        bytes_accessed=x_flat.size * x_flat.dtype.itemsize
        + (w1f.size + w2f.size + b1_2d.size + b2_2d.size + B * C) * 4,
    )

    out = pl.pallas_call(
        kernel,
        out_shape=jax.ShapeDtypeStruct((B, C), jnp.float32),
        grid_spec=pltpu.PrefetchScalarGridSpec(
            num_scalar_prefetch=0,
            grid=grid,
            in_specs=[
                # Activation: tiled over batch and spatial; double-buffered by Pallas.
                pl.BlockSpec((TB, C, THW), lambda b, s: (b, 0, s)),
                # Weights / biases: resident (constant block index across the grid).
                pl.BlockSpec((C, Cr), lambda b, s: (0, 0)),
                pl.BlockSpec((1, Cr), lambda b, s: (0, 0)),
                pl.BlockSpec((Cr, C), lambda b, s: (0, 0)),
                pl.BlockSpec((1, C), lambda b, s: (0, 0)),
            ],
            out_specs=pl.BlockSpec((TB, C), lambda b, s: (b, 0)),
            scratch_shapes=[pltpu.VMEM((TB, C), jnp.float32)],
        ),
        compiler_params=pltpu.CompilerParams(
            dimension_semantics=("parallel", "arbitrary"),
            vmem_limit_bytes=64 * 1024 * 1024,
        ),
        cost_estimate=cost,
    )(x_flat, w1f, b1_2d, w2f, b2_2d)

    return out.reshape(B, C, 1, 1)


def init_params(key, in_channels, r=4):
    hidden = in_channels // r
    k1, k2, k3, k4 = jax.random.split(key, 4)
    # Deterministic synthetic init (shapes match nn.Linear; stored as (in, out)).
    w1 = jax.random.normal(k1, (in_channels, hidden), jnp.float32) * 0.1
    b1 = jax.random.normal(k2, (hidden,), jnp.float32) * 0.1
    w2 = jax.random.normal(k3, (hidden, in_channels), jnp.float32) * 0.1
    b2 = jax.random.normal(k4, (in_channels,), jnp.float32) * 0.1
    return w1, b1, w2, b2


if __name__ == "__main__":
    B, C, H, W = 2, 4, 16, 16
    key = jax.random.PRNGKey(0)
    kx, kp = jax.random.split(key)
    x = jax.random.normal(kx, (B, C, H, W), jnp.float32)
    w1, b1, w2, b2 = init_params(kp, C, r=4)

    y = se_block(x, w1, b1, w2, b2)
    jax.block_until_ready(y)

    # Pure-JAX reference of the same semantics (mean -> FC1+ReLU -> FC2+sigmoid).
    s = x.astype(jnp.float32).mean(axis=(2, 3))          # (B, C)
    h = jnp.maximum(s @ w1 + b1, 0.0)                    # (B, C//r)
    ref = jax.nn.sigmoid(h @ w2 + b2).reshape(B, C, 1, 1)
    assert y.shape == (B, C, 1, 1)
    assert jnp.allclose(y, ref, atol=1e-5), "mismatch vs reference"

    print("KERNEL_OK")
</pallas_src>

<mosaic_0001>
module attributes {stable_mosaic.version = 11 : i64} {
  func.func @_se_kernel(%arg0: i32, %arg1: i32, %arg2: memref<2x4x256xf32, #tpu.memory_space<vmem>>, %arg3: memref<4x1xf32, #tpu.memory_space<vmem>>, %arg4: memref<1x1xf32, #tpu.memory_space<vmem>>, %arg5: memref<1x4xf32, #tpu.memory_space<vmem>>, %arg6: memref<1x4xf32, #tpu.memory_space<vmem>>, %arg7: memref<2x4xf32, #tpu.memory_space<vmem>>, %arg8: memref<2x4xf32, #tpu.memory_space<vmem>>) attributes {dimension_semantics = [#tpu.dimension_semantics<parallel>, #tpu.dimension_semantics<arbitrary>], iteration_bounds = array<i64: 1, 1>, scalar_prefetch = 0 : i64, scratch_operands = 1 : i64, tpu.core_type = #tpu.core_type<tc>, window_params = [{transform_indices = @transform_0, window_bounds = array<i64: 2, 4, 256>}, {pipeline_mode = #tpu.pipeline_mode<synchronous>, transform_indices = @transform_1, window_bounds = array<i64: 4, 1>}, {pipeline_mode = #tpu.pipeline_mode<synchronous>, transform_indices = @transform_2, window_bounds = array<i64: 1, 1>}, {pipeline_mode = #tpu.pipeline_mode<synchronous>, transform_indices = @transform_3, window_bounds = array<i64: 1, 4>}, {pipeline_mode = #tpu.pipeline_mode<synchronous>, transform_indices = @transform_4, window_bounds = array<i64: 1, 4>}, {transform_indices = @transform_5, window_bounds = array<i64: 2, 4>}]} {
    %c0_i32 = arith.constant 0 : i32
    %0 = arith.cmpi eq, %arg1, %c0_i32 : i32
    %1 = arith.extui %0 : i1 to i32
    %c0_i32_0 = arith.constant 0 : i32
    %2 = arith.cmpi ne, %1, %c0_i32_0 : i32
    scf.if %2 {
      %cst_9 = arith.constant 0.000000e+00 : f32
      %11 = vector.broadcast %cst_9 : f32 to vector<2x4xf32>
      %c0_10 = arith.constant 0 : index
      %c0_11 = arith.constant 0 : index
      %12 = vector.load %arg8[%c0_10, %c0_11] : memref<2x4xf32, #tpu.memory_space<vmem>>, vector<2x4xf32>
      tpu.vector_store %arg8[%c0_10, %c0_11], %11 {strides = array<i32>} : memref<2x4xf32, #tpu.memory_space<vmem>>, vector<2x4xf32>,
    } else {
    }
    %c0 = arith.constant 0 : index
    %c0_1 = arith.constant 0 : index
    %c0_2 = arith.constant 0 : index
    %3 = vector.load %arg2[%c0, %c0_1, %c0_2] : memref<2x4x256xf32, #tpu.memory_space<vmem>>, vector<2x4x256xf32>
    %c0_3 = arith.constant 0 : index
    %c0_4 = arith.constant 0 : index
    %4 = vector.load %arg8[%c0_3, %c0_4] : memref<2x4xf32, #tpu.memory_space<vmem>>, vector<2x4xf32>
    %cst = arith.constant dense<0.000000e+00> : vector<2x4xf32>
    %5 = vector.multi_reduction <add>, %3, %cst [2] : vector<2x4x256xf32> to vector<2x4xf32>
    %6 = arith.addf %4, %5 : vector<2x4xf32>
    %c0_5 = arith.constant 0 : index
    %c0_6 = arith.constant 0 : index
    %7 = vector.load %arg8[%c0_5, %c0_6] : memref<2x4xf32, #tpu.memory_space<vmem>>, vector<2x4xf32>
    tpu.vector_store %arg8[%c0_5, %c0_6], %6 {strides = array<i32>} : memref<2x4xf32, #tpu.memory_space<vmem>>, vector<2x4xf32>,
    %c0_i32_7 = arith.constant 0 : i32
    %8 = arith.cmpi eq, %arg1, %c0_i32_7 : i32
    %9 = arith.extui %8 : i1 to i32
    %c0_i32_8 = arith.constant 0 : i32
    %10 = arith.cmpi ne, %9, %c0_i32_8 : i32
    scf.if %10 {
      %c0_9 = arith.constant 0 : index
      %c0_10 = arith.constant 0 : index
      %11 = vector.load %arg8[%c0_9, %c0_10] : memref<2x4xf32, #tpu.memory_space<vmem>>, vector<2x4xf32>
      %cst_11 = arith.constant 3.906250e-03 : f32
      %12 = vector.broadcast %cst_11 : f32 to vector<2x4xf32>
      %13 = arith.mulf %11, %12 : vector<2x4xf32>
      %c0_12 = arith.constant 0 : index
      %c0_13 = arith.constant 0 : index
      %14 = vector.load %arg3[%c0_12, %c0_13] : memref<4x1xf32, #tpu.memory_space<vmem>>, vector<4x1xf32>
      %cst_14 = arith.constant dense<0.000000e+00> : vector<2x1xf32>
      %15 = tpu.matmul %13, %14, %cst_14 {dimension_numbers = #tpu.dot_dimension_numbers<[1], [0], [0], [1], [0, 0, 1, 1], [], []>} : vector<2x4xf32>, vector<4x1xf32>, vector<2x1xf32> -> vector<2x1xf32>
      %c0_15 = arith.constant 0 : index
      %c0_16 = arith.constant 0 : index
      %16 = vector.load %arg4[%c0_15, %c0_16] : memref<1x1xf32, #tpu.memory_space<vmem>>, vector<1x1xf32>
      %17 = vector.broadcast %16 : vector<1x1xf32> to vector<2x1xf32>
      %18 = arith.addf %15, %17 : vector<2x1xf32>
      %cst_17 = arith.constant 0.000000e+00 : f32
      %19 = vector.broadcast %cst_17 : f32 to vector<2x1xf32>
      %20 = arith.maximumf %18, %19 : vector<2x1xf32>
      %c0_18 = arith.constant 0 : index
      %c0_19 = arith.constant 0 : index
      %21 = vector.load %arg5[%c0_18, %c0_19] : memref<1x4xf32, #tpu.memory_space<vmem>>, vector<1x4xf32>
      %cst_20 = arith.constant dense<0.000000e+00> : vector<2x4xf32>
      %22 = tpu.matmul %20, %21, %cst_20 {dimension_numbers = #tpu.dot_dimension_numbers<[1], [0], [0], [1], [0, 0, 1, 1], [], []>} : vector<2x1xf32>, vector<1x4xf32>, vector<2x4xf32> -> vector<2x4xf32>
      %c0_21 = arith.constant 0 : index
      %c0_22 = arith.constant 0 : index
      %23 = vector.load %arg6[%c0_21, %c0_22] : memref<1x4xf32, #tpu.memory_space<vmem>>, vector<1x4xf32>
      %24 = vector.broadcast %23 : vector<1x4xf32> to vector<2x4xf32>
      %25 = arith.addf %22, %24 : vector<2x4xf32>
      %26 = arith.negf %25 : vector<2x4xf32>
      %27 = math.exp %26 : vector<2x4xf32>
      %cst_23 = arith.constant 1.000000e+00 : f32
      %28 = vector.broadcast %cst_23 : f32 to vector<2x4xf32>
      %29 = arith.addf %28, %27 : vector<2x4xf32>
      %30 = arith.divf %28, %29 : vector<2x4xf32>
      %c0_24 = arith.constant 0 : index
      %c0_25 = arith.constant 0 : index
      %31 = vector.load %arg7[%c0_24, %c0_25] : memref<2x4xf32, #tpu.memory_space<vmem>>, vector<2x4xf32>
      tpu.vector_store %arg7[%c0_24, %c0_25], %30 {strides = array<i32>} : memref<2x4xf32, #tpu.memory_space<vmem>>, vector<2x4xf32>,
    } else {
    }
    return
  }
  func.func @transform_0(%arg0: i32, %arg1: i32) -> (i32, i32, i32) {
    %c0_i32 = arith.constant 0 : i32
    %c0_i32_0 = arith.constant 0 : i32
    return %arg0, %c0_i32, %arg1 : i32, i32, i32
  }
  func.func @transform_1(%arg0: i32, %arg1: i32) -> (i32, i32) {
    %c0_i32 = arith.constant 0 : i32
    %c0_i32_0 = arith.constant 0 : i32
    %c0_i32_1 = arith.constant 0 : i32
    return %c0_i32, %c0_i32_0 : i32, i32
  }
  func.func @transform_2(%arg0: i32, %arg1: i32) -> (i32, i32) {
    %c0_i32 = arith.constant 0 : i32
    %c0_i32_0 = arith.constant 0 : i32
    %c0_i32_1 = arith.constant 0 : i32
    return %c0_i32, %c0_i32_0 : i32, i32
  }
  func.func @transform_3(%arg0: i32, %arg1: i32) -> (i32, i32) {
    %c0_i32 = arith.constant 0 : i32
    %c0_i32_0 = arith.constant 0 : i32
    %c0_i32_1 = arith.constant 0 : i32
    return %c0_i32, %c0_i32_0 : i32, i32
  }
  func.func @transform_4(%arg0: i32, %arg1: i32) -> (i32, i32) {
    %c0_i32 = arith.constant 0 : i32
    %c0_i32_0 = arith.constant 0 : i32
    %c0_i32_1 = arith.constant 0 : i32
    return %c0_i32, %c0_i32_0 : i32, i32
  }
  func.func @transform_5(%arg0: i32, %arg1: i32) -> (i32, i32) {
    %c0_i32 = arith.constant 0 : i32
    %c0_i32_0 = arith.constant 0 : i32
    return %arg0, %c0_i32 : i32, i32
  }
}

</mosaic_0001>

<bundles_post_ra>
// kernel: tpu_custom_call.1
= control target key start
LH: loop header
LB: loop body
LE: loop exit
PB: predicated region body
PF: predicated region fallthrough
CT: control target
= control target key end

     0   :  { %s588_s0 = inlined_call_operand.hbm [shape: f32[2,4,256], index: 0, kind: input, shape index: {}]   ;;  %s589_s1 = inlined_call_operand.hbm [shape: f32[4,1], index: 1, kind: input, shape index: {}]   ;;  %s590_s2 = inlined_call_operand.<no memory space> [shape: f32[1,1], index: 2, kind: input, shape index: {}]   ;;  %s591_s3 = inlined_call_operand.hbm [shape: f32[1,4], index: 3, kind: input, shape index: {}]   ;;  %s592_s4 = inlined_call_operand.hbm [shape: f32[1,4], index: 4, kind: input, shape index: {}]   ;;  %s593_s5 = inlined_call_operand.hbm [shape: f32[2,4], index: 5, kind: output, shape index: {}]  }
   0x1   :  { %v10_v0 = vstv %s590_s2 }
   0x2   :  { %11 = vst [vmem:[#allocation3] sm:$0x1] %v10_v0 }
   0x3   :  { %12 = vsyncpa [#allocation5], 0 }
   0x4   :  { %13 = vsyncpa [#allocation8], 0 }
   0x5   :  { %14 = vsyncpa [#allocation11], 0 }
   0x6   :  { %15 = vsyncpa [#allocation6], 0  ;;  %s471_s20 = smov [#allocation7]   ;;  %s472_s22 = smov [#allocation4]  }
   0x7   :  { %s34_s21 = sshll.u32 %s471_s20, 4  ;;  %s21_s23 = sshll.u32 %s472_s22, 4  ;;  %s35_s21 = int_to_ptr.vmem [resolvable:$true] %s34_s21  ;;  %s513_s23 = int_to_ptr.vmem [resolvable:$true] %s21_s23 }
   0x8   :  { %s353_s26 = scalar_lea.hbm %s589_s1, 64 }
   0x9   :  { %p354_p0 = scmp.ne.s32.totalorder %s589_s1, %s353_s26  ;;  %p357_p1 = scmp.lt.u32.totalorder %s353_s26, %s589_s1 }
   0xb   :  { %p359_p2 = pnand %p357_p1, %p354_p0 }
   0xd   :  { %362 = shalt.err (!%p359_p2)
}
   0xe   :  { %s363_s30 = scalar_lea.vmem %s35_s21, 64  ;;  %p368_p4 = scmp.lt.s32.totalorder %s35_s21, %s35_s21 }
   0xf   :  { %p364_p3 = scmp.ne.s32.totalorder %s35_s21, %s363_s30  ;;  %p369_p5 = scmp.lt.s32.totalorder %s363_s30, %s363_s30 }
  0x11   :  { %p370_p6 = por %p369_p5, %p368_p4 }
  0x13   :  { %p371_p7 = pnand %p370_p6, %p364_p3 }
  0x15   :  { %374 = shalt.err (!%p371_p7)
}
  0x16   :  { %37 = dma.hbm_to_vmem [thread:$0]  %s589_s1, 64, %s35_s21, [#allocation8]  }
  0x17   :  { %s375_s10 = scalar_lea.hbm %s588_s0, 256 }
  0x18   :  { %p376_p8 = scmp.ne.s32.totalorder %s588_s0, %s375_s10  ;;  %p379_p9 = scmp.lt.u32.totalorder %s375_s10, %s588_s0 }
  0x1a   :  { %p381_p10 = pnand %p379_p9, %p376_p8 }
  0x1c   :  { %384 = shalt.err (!%p381_p10)
}
  0x1d   :  { %s385_s15 = scalar_lea.vmem %s513_s23, 256  ;;  %p390_p12 = scmp.lt.s32.totalorder %s513_s23, %s513_s23 }
  0x1e   :  { %p386_p11 = scmp.ne.s32.totalorder %s513_s23, %s385_s15  ;;  %p391_p13 = scmp.lt.s32.totalorder %s385_s15, %s385_s15 }
  0x20   :  { %p392_p0 = por %p391_p13, %p390_p12 }
  0x22   :  { %p393_p1 = pnand %p392_p0, %p386_p11 }
  0x24   :  { %396 = shalt.err (!%p393_p1)
}
  0x25   :  { %s473_s1 = smov 128   ;;  %s474_s16 = smov 8  }
  0x26   :  { %27 = dma.hbm_to_vmem [thread:$0]  %s588_s0, 256, %s513_s23, [#allocation5], %s473_s1, %s473_s1, %s474_s16  }
  0x27   :  { %s475_s19 = smov [#allocation9]   ;;  %s476_s21 = smov [#allocation10]  }
  0x28   :  { %s46_s20 = sshll.u32 %s475_s19, 4  ;;  %s56_s22 = sshll.u32 %s476_s21, 4  ;;  %s47_s20 = int_to_ptr.vmem [resolvable:$true] %s46_s20  ;;  %s57_s22 = int_to_ptr.vmem [resolvable:$true] %s56_s22 }
  0x29   :  { %s397_s26 = scalar_lea.hbm %s591_s3, 16 }
  0x2a   :  { %p398_p2 = scmp.ne.s32.totalorder %s591_s3, %s397_s26  ;;  %p401_p3 = scmp.lt.u32.totalorder %s397_s26, %s591_s3 }
  0x2c   :  { %p403_p4 = pnand %p401_p3, %p398_p2 }
  0x2e   :  { %406 = shalt.err (!%p403_p4)
}
  0x2f   :  { %s407_s0 = scalar_lea.vmem %s47_s20, 16  ;;  %s411_s23 = scalar_lea.vmem %s47_s20, 32 }
  0x30   :  { %p408_p5 = scmp.ne.s32.totalorder %s47_s20, %s407_s0  ;;  %p412_p6 = scmp.lt.s32.totalorder %s47_s20, %s47_s20 }
  0x31   :  { %p413_p7 = scmp.lt.s32.totalorder %s411_s23, %s407_s0 }
  0x33   :  { %p414_p8 = por %p413_p7, %p412_p6 }
  0x35   :  { %p415_p9 = pnand %p414_p8, %p408_p5 }
  0x37   :  { %418 = shalt.err (!%p415_p9)
}
  0x38   :  { %49 = dma.hbm_to_vmem [thread:$0]  %s591_s3, 16, %s47_s20, [#allocation8]  }
  0x39   :  { %s419_s9 = scalar_lea.hbm %s592_s4, 16 }
  0x3a   :  { %p420_p10 = scmp.ne.s32.totalorder %s592_s4, %s419_s9  ;;  %p423_p11 = scmp.lt.u32.totalorder %s419_s9, %s592_s4 }
  0x3c   :  { %p425_p12 = pnand %p423_p11, %p420_p10 }
  0x3e   :  { %428 = shalt.err (!%p425_p12)
}
  0x3f   :  { %s429_s14 = scalar_lea.vmem %s57_s22, 16  ;;  %s433_s15 = scalar_lea.vmem %s57_s22, 32 }
  0x40   :  { %p430_p13 = scmp.ne.s32.totalorder %s57_s22, %s429_s14  ;;  %p434_p0 = scmp.lt.s32.totalorder %s57_s22, %s57_s22 }
  0x41   :  { %p435_p1 = scmp.lt.s32.totalorder %s433_s15, %s429_s14 }
  0x43   :  { %p436_p2 = por %p435_p1, %p434_p0 }
  0x45   :  { %p437_p3 = pnand %p436_p2, %p430_p13 }
  0x47   :  { %440 = shalt.err (!%p437_p3)
}
  0x48   :  { %59 = dma.hbm_to_vmem [thread:$0]  %s592_s4, 16, %s57_s22, [#allocation11]  }
  0x49   :  { %463 = dma.done.wait [#allocation5], 256  }
  0x4a   :  { %464 = vsyncadd [#allocation5], 4294967040 }
  0x4b   :  { %465 = dma.done.wait [#allocation8], 80  }
  0x4c   :  { %466 = vsyncadd [#allocation8], 4294967216 }
  0x4d   :  { %467 = dma.done.wait [#allocation11], 16  }
  0x4e   :  { %468 = vsyncadd [#allocation11], 4294967280  ;;  %vm87_vm0 = vcmask 1043456   ;;  %v78_v1 = vld [vmem:[#allocation4] sm:$0xff]  ;;  %v79_v2 = vld [vmem:[#allocation4 + $0x8] sm:$0xff]  ;;  %vm76_vm1 = vcmask 25600   ;;  %v100_v13 = vlaneseq }
  0x4f   :  { %v83_v3 = vcombine.high %v78_v1, %v78_v1  ;;  %v88_v4 = vsel %vm87_vm0, %v78_v1, 0.0  ;;  %v84_v5 = vcombine.high %v79_v2, %v79_v2  ;;  %v93_v7 = vsel %vm87_vm0, %v79_v2, 0.0  ;;  %v121_v12 = vld [vmem:[#allocation7] sm:$0xf]  ;;  %v207_v26 = vld [vmem:[#allocation9] sm:$0x1] }
  0x50   :  { %v477_v11 = vmov 0.0   ;;  %vm478_vm2 = vmmov 0   ;;  %v101_v14 = vand.u32 127, %v100_v13  ;;  %v103_v15 = vshrl.u32 %v100_v13, 7  ;;  %v317_v27 = vld [vmem:[#allocation3] ss:$0 sm:$0xff] }
  0x51   :  { %v89_v6 = vsel %vm87_vm0, %v83_v3, 0.0  ;;  %v94_v8 = vsel %vm87_vm0, %v84_v5, 0.0  ;;  %77 = vst.msk [vmem:[#allocation2] sm:$0x3] %vm76_vm1, %v477_v11  ;;  %328 = vmatprep.subr.mxu0 %v477_v11  ;;  %333 = vmatprep.subr.mxu1 %v477_v11  ;;  %vm110_vm3 = vcmask 1041409   ;;  %vm129_vm4 = vcmask 31744  }
  0x52   :  { %v90_v9 = vadd.f32 %v89_v6, %v88_v4  ;;  %v95_v10 = vadd.f32 %v94_v8, %v93_v7  ;;  %329 = vmatpush3.msk.msra.mxu0 %vm87_vm0, %v121_v12  ;;  %330 = vmatprep.mubr.msk.f32.mxu0 %vm478_vm2, %v477_v11  ;;  %v104_v17 = vsub.s32 %v101_v14, %v103_v15  ;;  %vm219_vm5 = vcmask 1040384   ;;  %v320_v32 = vld [vmem:[#allocation10] ss:$0 sm:$0xff]  ;;  %s479_s4 = smov [#allocation12]  }
  0x53   :  { %335 = vmatprep.mubr.msk.f32.mxu1 %vm478_vm2, %v477_v11  ;;  %334 = vmatpush3.msk.msra.mxu1 %vm219_vm5, %v207_v26  ;;  %vm215_vm6 = vcmask 7168   ;;  %s306_s16 = sshll.u32 %s479_s4, 4  ;;  %s307_s16 = int_to_ptr.vmem [resolvable:$true] %s306_s16 }
  0x54   :  { %91 = vadd.xlane.f32.xlu0 %v90_v9  ;;  %s441_s17 = scalar_lea.vmem %s307_s16, 32  ;;  %p446_p5 = scmp.lt.s32.totalorder %s307_s16, %s307_s16 }
  0x55   :  { %p442_p4 = scmp.ne.s32.totalorder %s307_s16, %s441_s17  ;;  %p447_p6 = scmp.lt.s32.totalorder %s441_s17, %s441_s17 }
  0x57   :  { %p448_p7 = por %p447_p6, %p446_p5 }
  0x58   :  { %96 = vadd.xlane.f32.xlu0 %v95_v10  ;;  %v80_v21 = vld [vmem:[#allocation2] sm:$0x3] }
  0x59   :  { %p449_p8 = pnand %p448_p7, %p442_p4 }
  0xe1   :  { %v92_v16 = vpop.xlane.xlu0 %91 }
  0xe2   :  { %v105_v19 = vrot.slane %v92_v16, %v104_v17 }
  0xe5   :  { %v97_v18 = vpop.xlane.xlu0 %96 }
  0xe6   :  { %v109_v20 = vrot.slane %v97_v18, %v104_v17 }
  0xe8   :  { %v111_v22 = vsel %vm110_vm3, %v109_v20, %v105_v19 }
  0xe9   :  { %v113_v23 = vadd.f32 %v111_v22, %v80_v21 }
  0xeb   :  { %115 = vst.msk [vmem:[#allocation2] sm:$0x3] %vm76_vm1, %v113_v23 }
  0xf2   :  { %v119_v24 = vld [vmem:[#allocation2] sm:$0x3] }
  0xf3   :  { %v120_v25 = vmul.f32 0.00390625, %v119_v24 }
  0xf5   :  { %331 = vmatmul.mubr.msk.f32.vlgmr.msra.gmra.mrb[0].mxu0 %vm129_vm4, %v120_v25 }
 0x1c8   :  { %v202_v28 = vpop.f32.mrb[0].mxu0 }
 0x1c9   :  { %v203_v29 = vadd.f32 %v317_v27, %v202_v28  ;;  %v332_v30 = vpop.f32.mrb[1].mxu0 }
 0x1cb   :  { %v206_v31 = vmax.f32 %v203_v29, 0.0 }
 0x1cd   :  { %336 = vmatmul.mubr.msk.f32.vlgmr.msra.gmra.mrb[0].mxu1 %vm215_vm6, %v206_v31 }
 0x2a0   :  { %v289_v33 = vpop.f32.mrb[0].mxu1 }
 0x2a1   :  { %v290_v34 = vadd.f32 %v320_v32, %v289_v33  ;;  %v337_v35 = vpop.f32.mrb[1].mxu1 }
 0x2a3   :  { %v323_v36 = vmul.f32 -1.442695, %v290_v34 }
 0x2a5   :  { %349 = vpow2.f32 %v323_v36 }
 0x2af   :  { %v350_v37 = vpop.eup %349 }
 0x2b0   :  { %v296_v38 = vadd.f32 1.0, %v350_v37 }
 0x2b2   :  { %351 = vrcp.f32 %v296_v38 }
 0x2bc   :  { %v352_v39 = vpop.eup %351 }
 0x2bd   :  { %299 = vst.msk [vmem:[#allocation12] sm:$0x3] %vm76_vm1, %v352_v39 }
 0x2be   :  { %452 = shalt.err (!%p449_p8)
}
 0x2bf   :  { %s453_s20 = scalar_lea.hbm %s593_s5, 32 }
 0x2c0   :  { %p454_p9 = scmp.ne.s32.totalorder %s593_s5, %s453_s20  ;;  %p457_p10 = scmp.lt.u32.totalorder %s453_s20, %s593_s5 }
 0x2c2   :  { %p459_p11 = pnand %p457_p10, %p454_p9 }
 0x2c4   :  { %462 = shalt.err (!%p459_p11)
}
 0x2c5   :  { %309 = dma.vmem_to_hbm [thread:$0]  %s307_s16, 32, %s593_s5, [#allocation6]  }
 0x2c6   :  { %469 = dma.done.wait [#allocation6], 32  }
 0x2c7   :  { %470 = vsyncadd [#allocation6], 4294967264 }
 0x2c8   :  { %313 = vsyncpa [#allocation5], 1 }
 0x2c9   :  { %314 = vsyncpa [#allocation8], 1 }
 0x2ca   :  { %315 = vsyncpa [#allocation11], 1 }
 0x2cb   :  { %316 = vsyncpa [#allocation6], 1 }

</bundles_post_ra>
